<compile_context>
chip_gen: v7x
topology: tpu7x:2x2x1
jax: 0.10.0
libtpu: 0.0.40
codegen_flags: <defaults>
</compile_context>

<pallas_src>
import functools
import math

import jax
import jax.numpy as jnp
from jax.experimental import pallas as pl
from jax.experimental.pallas import tpu as pltpu

_LANE = 128  # lane width (last dim)


def _round_up(x, m):
    return ((x + m - 1) // m) * m


def _sublane(dtype):
    # Minimum second-to-last tile dim: 8 for f32, 16 for bf16 (sublane packing).
    return 16 if dtype == jnp.bfloat16 else 8


def _vmem_limit_bytes():
    # Generation-aware scoped-VMEM budget: 3/4 of physical VMEM.
    #   v5e/v6e (128 MiB physical) -> 96 MiB, v7x (64 MiB physical) -> 48 MiB.
    try:
        cap = int(pltpu.get_tpu_info().vmem_capacity_bytes)
    except Exception:
        cap = 64 * 1024 * 1024  # unknown chip: assume the smallest (v7x)
    return (cap * 3) // 4


def _fused_fc_kernel(x_ref, w1_ref, b1_ref, w2_ref, b2_ref,
                     act1_ref, act2_ref, acc_ref):
    k = pl.program_id(1)

    @pl.when(k == 0)
    def _():
        acc_ref[...] = jnp.zeros_like(acc_ref)

    # Layer 1 partial product for this K slab (MXU, f32 accumulation).
    acc_ref[...] += jnp.dot(x_ref[...], w1_ref[...],
                            preferred_element_type=jnp.float32)

    @pl.when(k == pl.num_programs(1) - 1)
    def _():
        a1 = jnp.tanh(acc_ref[...] + b1_ref[...])   # VPU bias add + EUP tanh
        act1_ref[...] = a1                           # lane-dense unmasked store
        # Re-read act1 from its VMEM tile (lets the compiler release the f32
        # vregs holding `a1` before the second matmul -> no spill traffic).
        a1_c = act1_ref[...].astype(w2_ref.dtype)
        act2_ref[...] = jnp.tanh(
            jnp.dot(a1_c, w2_ref[...], preferred_element_type=jnp.float32)
            + b2_ref[...]
        )


def fused_fc_tanh(x_flat, w1_p, b1_p, w2_p, b2_p, *, hidden_dim, output_dim,
                  tile_m_max=128, tile_k_max=512):
    """act1 = tanh(x @ w1 + b1); act2 = tanh(act1 @ w2 + b2), one pallas_call.

    x_flat: (B, K) f32;  w1_p: (Kp, Hp) / w2_p: (Hp, Np) pre-padded (compute dtype);
    b1_p: (1, Hp) f32;  b2_p: (1, Np) f32.
    """
    B, K = x_flat.shape
    Kp, Hp = w1_p.shape
    Hp2, Np = w2_p.shape
    assert Hp == Hp2
    compute_dtype = w1_p.dtype

    # Batch tile: default 128 (fills MXU M rows, amortizes per-step overhead),
    # shrunk to the sublane-aligned batch for tiny B so we don't pad 2 -> 128.
    sub = max(_sublane(compute_dtype), 8)
    tile_m = min(tile_m_max, _round_up(B, sub))
    Bp = _round_up(B, tile_m)

    # K tile: a multiple of 128 that divides Kp (W1 streamed in these slabs).
    tile_k = min(Kp, tile_k_max)
    while Kp % tile_k:
        tile_k -= _LANE

    # Per-call padding is only needed for the activations (x), and only if the
    # shapes are not already aligned.  Zero padding is exact: padded K columns /
    # hidden columns / W2 rows are all zero, padded batch rows are sliced off.
    x_c = x_flat.astype(compute_dtype)
    if (Bp, Kp) != (B, K):
        x_c = jnp.zeros((Bp, Kp), compute_dtype).at[:B, :K].set(x_c)

    grid = (Bp // tile_m, Kp // tile_k)  # reduction (K) axis last

    act1_p, act2_p = pl.pallas_call(
        _fused_fc_kernel,
        out_shape=(
            jax.ShapeDtypeStruct((Bp, Hp), jnp.float32),
            jax.ShapeDtypeStruct((Bp, Np), jnp.float32),
        ),
        grid=grid,
        in_specs=[
            pl.BlockSpec((tile_m, tile_k), lambda i, k: (i, k)),  # x: M x K tiles
            pl.BlockSpec((tile_k, Hp),     lambda i, k: (k, 0)),  # W1: streamed slabs
            pl.BlockSpec((1, Hp),          lambda i, k: (0, 0)),  # b1 (resident)
            pl.BlockSpec((Hp, Np),         lambda i, k: (0, 0)),  # W2 (resident)
            pl.BlockSpec((1, Np),          lambda i, k: (0, 0)),  # b2 (resident)
        ],
        out_specs=(
            pl.BlockSpec((tile_m, Hp), lambda i, k: (i, 0)),
            pl.BlockSpec((tile_m, Np), lambda i, k: (i, 0)),
        ),
        scratch_shapes=[pltpu.VMEM((tile_m, Hp), jnp.float32)],
        compiler_params=pltpu.CompilerParams(
            # Batch tiles independent -> shard across TensorCores on v7x;
            # K is a reduction -> arbitrary.
            dimension_semantics=("parallel", "arbitrary"),
            vmem_limit_bytes=_vmem_limit_bytes(),
        ),
    )(x_c, w1_p, b1_p, w2_p, b2_p)

    H, N = hidden_dim, output_dim
    act1 = act1_p[:B, :H] if (Bp, Hp) != (B, H) else act1_p
    act2 = act2_p[:B, :N] if (Bp, Np) != (B, N) else act2_p
    return act1, act2


def init_linear_params(key, in_dim, out_dim):
    """Deterministic init matching nn.Linear's default (uniform +/- 1/sqrt(fan_in))."""
    kw, kb = jax.random.split(key)
    bound = 1.0 / math.sqrt(in_dim)
    # PyTorch stores weight as (out, in); keep the transposed (in, out) form so
    # the kernel does x @ w_t directly.
    w_t = jax.random.uniform(kw, (in_dim, out_dim), jnp.float32, -bound, bound)
    b = jax.random.uniform(kb, (out_dim,), jnp.float32, -bound, bound)
    return w_t, b


def prepare_fc_params(w1_t, b1, w2_t, b2, compute_dtype=jnp.bfloat16):
    """Pad (lane-align) + cast the FC weights ONCE, outside the per-call path."""
    K, H = w1_t.shape
    H2, N = w2_t.shape
    assert H == H2
    Kp, Hp, Np = _round_up(K, _LANE), _round_up(H, _LANE), _round_up(N, _LANE)

    w1_p = jnp.zeros((Kp, Hp), compute_dtype).at[:K, :H].set(w1_t.astype(compute_dtype))
    b1_p = jnp.zeros((1, Hp), jnp.float32).at[0, :H].set(b1)
    w2_p = jnp.zeros((Hp, Np), compute_dtype).at[:H, :N].set(w2_t.astype(compute_dtype))
    b2_p = jnp.zeros((1, Np), jnp.float32).at[0, :N].set(b2)
    return (w1_p, b1_p, w2_p, b2_p)


@functools.partial(jax.jit, static_argnames=("hidden_dim", "im_h", "im_w"))
def fc_swin_forward(x_nchw, padded_params, *, hidden_dim, im_h, im_w):
    """Reproduces FC_SWIN.forward for the FC/tanh part. Returns (fc, act1, act2)."""
    w1_p, b1_p, w2_p, b2_p = padded_params
    B = x_nchw.shape[0]
    x_flat = x_nchw.reshape(B, -1)                        # x.view(x.size(0), -1)
    act1, act2 = fused_fc_tanh(x_flat, w1_p, b1_p, w2_p, b2_p,
                               hidden_dim=hidden_dim, output_dim=im_h * im_w)
    fc = act2.reshape(-1, 1, im_h, im_w)                  # act2.view(-1, 1, H, W)
    # TODO(synk): y = SwinUNETR(fc) — external MONAI sub-network, not translated.
    return fc, act1, act2


if __name__ == "__main__":
    # Small shapes consistent with the module:
    #   img_size = (16, 16) -> input_dim = output_dim = 256, hidden_dim = 32
    B = 2
    IM_H, IM_W = 16, 16
    INPUT_DIM = IM_H * IM_W      # 256
    HIDDEN_DIM = 32
    OUTPUT_DIM = IM_H * IM_W     # 256

    key = jax.random.PRNGKey(0)
    k_x, k_fc1, k_fc2 = jax.random.split(key, 3)

    x = jax.random.normal(k_x, (B, 1, IM_H, IM_W), jnp.float32)

    w1_t, b1 = init_linear_params(k_fc1, INPUT_DIM, HIDDEN_DIM)
    w2_t, b2 = init_linear_params(k_fc2, HIDDEN_DIM, OUTPUT_DIM)
    padded_params = prepare_fc_params(w1_t, b1, w2_t, b2, compute_dtype=jnp.bfloat16)

    fc, act1, act2 = fc_swin_forward(x, padded_params,
                                     hidden_dim=HIDDEN_DIM, im_h=IM_H, im_w=IM_W)
    jax.block_until_ready((fc, act1, act2))

    # Reference with matching numerics (bf16 MXU operands, f32 accumulation).
    cd = jnp.bfloat16
    x_flat = x.reshape(B, -1)
    ref1 = jnp.tanh(jnp.dot(x_flat.astype(cd), w1_t.astype(cd),
                            preferred_element_type=jnp.float32) + b1)
    ref2 = jnp.tanh(jnp.dot(ref1.astype(cd), w2_t.astype(cd),
                            preferred_element_type=jnp.float32) + b2)

    assert fc.shape == (B, 1, IM_H, IM_W)
    assert act1.shape == (B, HIDDEN_DIM)
    assert act2.shape == (B, OUTPUT_DIM)
    assert jnp.allclose(act1, ref1, atol=2e-3), float(jnp.max(jnp.abs(act1 - ref1)))
    assert jnp.allclose(act2, ref2, atol=2e-3), float(jnp.max(jnp.abs(act2 - ref2)))
    assert jnp.allclose(fc, ref2.reshape(-1, 1, IM_H, IM_W), atol=2e-3)

    print("KERNEL_OK")
</pallas_src>

<mosaic_0001>
module attributes {stable_mosaic.version = 11 : i64} {
  func.func @_fused_fc_kernel(%arg0: i32, %arg1: i32, %arg2: memref<16x256xbf16, #tpu.memory_space<vmem>>, %arg3: memref<256x128xbf16, #tpu.memory_space<vmem>>, %arg4: memref<1x128xf32, #tpu.memory_space<vmem>>, %arg5: memref<128x256xbf16, #tpu.memory_space<vmem>>, %arg6: memref<1x256xf32, #tpu.memory_space<vmem>>, %arg7: memref<16x128xf32, #tpu.memory_space<vmem>>, %arg8: memref<16x256xf32, #tpu.memory_space<vmem>>, %arg9: memref<16x128xf32, #tpu.memory_space<vmem>>) attributes {dimension_semantics = [#tpu.dimension_semantics<parallel>, #tpu.dimension_semantics<arbitrary>], iteration_bounds = array<i64: 1, 1>, scalar_prefetch = 0 : i64, scratch_operands = 1 : i64, tpu.core_type = #tpu.core_type<tc>, window_params = [{transform_indices = @transform_0, window_bounds = array<i64: 16, 256>}, {transform_indices = @transform_1, window_bounds = array<i64: 256, 128>}, {pipeline_mode = #tpu.pipeline_mode<synchronous>, transform_indices = @transform_2, window_bounds = array<i64: 1, 128>}, {pipeline_mode = #tpu.pipeline_mode<synchronous>, transform_indices = @transform_3, window_bounds = array<i64: 128, 256>}, {pipeline_mode = #tpu.pipeline_mode<synchronous>, transform_indices = @transform_4, window_bounds = array<i64: 1, 256>}, {transform_indices = @transform_5, window_bounds = array<i64: 16, 128>}, {transform_indices = @transform_6, window_bounds = array<i64: 16, 256>}]} {
    %c0_i32 = arith.constant 0 : i32
    %0 = arith.cmpi eq, %arg1, %c0_i32 : i32
    %1 = arith.extui %0 : i1 to i32
    %c0_i32_0 = arith.constant 0 : i32
    %2 = arith.cmpi ne, %1, %c0_i32_0 : i32
    scf.if %2 {
      %cst_10 = arith.constant 0.000000e+00 : f32
      %12 = vector.broadcast %cst_10 : f32 to vector<16x128xf32>
      %c0_11 = arith.constant 0 : index
      %c0_12 = arith.constant 0 : index
      %13 = vector.load %arg9[%c0_11, %c0_12] : memref<16x128xf32, #tpu.memory_space<vmem>>, vector<16x128xf32>
      tpu.vector_store %arg9[%c0_11, %c0_12], %12 {strides = array<i32>} : memref<16x128xf32, #tpu.memory_space<vmem>>, vector<16x128xf32>,
    } else {
    }
    %c0 = arith.constant 0 : index
    %c0_1 = arith.constant 0 : index
    %3 = vector.load %arg9[%c0, %c0_1] : memref<16x128xf32, #tpu.memory_space<vmem>>, vector<16x128xf32>
    %c0_2 = arith.constant 0 : index
    %c0_3 = arith.constant 0 : index
    %4 = vector.load %arg2[%c0_2, %c0_3] : memref<16x256xbf16, #tpu.memory_space<vmem>>, vector<16x256xbf16>
    %c0_4 = arith.constant 0 : index
    %c0_5 = arith.constant 0 : index
    %5 = vector.load %arg3[%c0_4, %c0_5] : memref<256x128xbf16, #tpu.memory_space<vmem>>, vector<256x128xbf16>
    %cst = arith.constant dense<0.000000e+00> : vector<16x128xf32>
    %6 = tpu.matmul %4, %5, %cst {dimension_numbers = #tpu.dot_dimension_numbers<[1], [0], [0], [1], [0, 0, 1, 1], [], []>} : vector<16x256xbf16>, vector<256x128xbf16>, vector<16x128xf32> -> vector<16x128xf32>
    %7 = arith.addf %3, %6 : vector<16x128xf32>
    %c0_6 = arith.constant 0 : index
    %c0_7 = arith.constant 0 : index
    %8 = vector.load %arg9[%c0_6, %c0_7] : memref<16x128xf32, #tpu.memory_space<vmem>>, vector<16x128xf32>
    tpu.vector_store %arg9[%c0_6, %c0_7], %7 {strides = array<i32>} : memref<16x128xf32, #tpu.memory_space<vmem>>, vector<16x128xf32>,
    %c0_i32_8 = arith.constant 0 : i32
    %9 = arith.cmpi eq, %arg1, %c0_i32_8 : i32
    %10 = arith.extui %9 : i1 to i32
    %c0_i32_9 = arith.constant 0 : i32
    %11 = arith.cmpi ne, %10, %c0_i32_9 : i32
    scf.if %11 {
      %c0_10 = arith.constant 0 : index
      %c0_11 = arith.constant 0 : index
      %12 = vector.load %arg9[%c0_10, %c0_11] : memref<16x128xf32, #tpu.memory_space<vmem>>, vector<16x128xf32>
      %c0_12 = arith.constant 0 : index
      %c0_13 = arith.constant 0 : index
      %13 = vector.load %arg4[%c0_12, %c0_13] : memref<1x128xf32, #tpu.memory_space<vmem>>, vector<1x128xf32>
      %14 = vector.broadcast %13 : vector<1x128xf32> to vector<16x128xf32>
      %15 = arith.addf %12, %14 : vector<16x128xf32>
      %16 = math.tanh %15 : vector<16x128xf32>
      %c0_14 = arith.constant 0 : index
      %c0_15 = arith.constant 0 : index
      %17 = vector.load %arg7[%c0_14, %c0_15] : memref<16x128xf32, #tpu.memory_space<vmem>>, vector<16x128xf32>
      tpu.vector_store %arg7[%c0_14, %c0_15], %16 {strides = array<i32>} : memref<16x128xf32, #tpu.memory_space<vmem>>, vector<16x128xf32>,
      %c0_16 = arith.constant 0 : index
      %c0_17 = arith.constant 0 : index
      %18 = vector.load %arg7[%c0_16, %c0_17] : memref<16x128xf32, #tpu.memory_space<vmem>>, vector<16x128xf32>
      %19 = arith.truncf %18 : vector<16x128xf32> to vector<16x128xbf16>
      %c0_18 = arith.constant 0 : index
      %c0_19 = arith.constant 0 : index
      %20 = vector.load %arg5[%c0_18, %c0_19] : memref<128x256xbf16, #tpu.memory_space<vmem>>, vector<128x256xbf16>
      %cst_20 = arith.constant dense<0.000000e+00> : vector<16x256xf32>
      %21 = tpu.matmul %19, %20, %cst_20 {dimension_numbers = #tpu.dot_dimension_numbers<[1], [0], [0], [1], [0, 0, 1, 1], [], []>} : vector<16x128xbf16>, vector<128x256xbf16>, vector<16x256xf32> -> vector<16x256xf32>
      %c0_21 = arith.constant 0 : index
      %c0_22 = arith.constant 0 : index
      %22 = vector.load %arg6[%c0_21, %c0_22] : memref<1x256xf32, #tpu.memory_space<vmem>>, vector<1x256xf32>
      %23 = vector.broadcast %22 : vector<1x256xf32> to vector<16x256xf32>
      %24 = arith.addf %21, %23 : vector<16x256xf32>
      %25 = math.tanh %24 : vector<16x256xf32>
      %c0_23 = arith.constant 0 : index
      %c0_24 = arith.constant 0 : index
      %26 = vector.load %arg8[%c0_23, %c0_24] : memref<16x256xf32, #tpu.memory_space<vmem>>, vector<16x256xf32>
      tpu.vector_store %arg8[%c0_23, %c0_24], %25 {strides = array<i32>} : memref<16x256xf32, #tpu.memory_space<vmem>>, vector<16x256xf32>,
    } else {
    }
    return
  }
  func.func @transform_0(%arg0: i32, %arg1: i32) -> (i32, i32) {
    %c0_i32 = arith.constant 0 : i32
    return %arg0, %arg1 : i32, i32
  }
  func.func @transform_1(%arg0: i32, %arg1: i32) -> (i32, i32) {
    %c0_i32 = arith.constant 0 : i32
    %c0_i32_0 = arith.constant 0 : i32
    return %arg1, %c0_i32 : i32, i32
  }
  func.func @transform_2(%arg0: i32, %arg1: i32) -> (i32, i32) {
    %c0_i32 = arith.constant 0 : i32
    %c0_i32_0 = arith.constant 0 : i32
    %c0_i32_1 = arith.constant 0 : i32
    return %c0_i32, %c0_i32_0 : i32, i32
  }
  func.func @transform_3(%arg0: i32, %arg1: i32) -> (i32, i32) {
    %c0_i32 = arith.constant 0 : i32
    %c0_i32_0 = arith.constant 0 : i32
    %c0_i32_1 = arith.constant 0 : i32
    return %c0_i32, %c0_i32_0 : i32, i32
  }
  func.func @transform_4(%arg0: i32, %arg1: i32) -> (i32, i32) {
    %c0_i32 = arith.constant 0 : i32
    %c0_i32_0 = arith.constant 0 : i32
    %c0_i32_1 = arith.constant 0 : i32
    return %c0_i32, %c0_i32_0 : i32, i32
  }
  func.func @transform_5(%arg0: i32, %arg1: i32) -> (i32, i32) {
    %c0_i32 = arith.constant 0 : i32
    %c0_i32_0 = arith.constant 0 : i32
    return %arg0, %c0_i32 : i32, i32
  }
  func.func @transform_6(%arg0: i32, %arg1: i32) -> (i32, i32) {
    %c0_i32 = arith.constant 0 : i32
    %c0_i32_0 = arith.constant 0 : i32
    return %arg0, %c0_i32 : i32, i32
  }
}

</mosaic_0001>

<bundles_post_ra>
// kernel: fc_swin_forward.1
= control target key start
LH: loop header
LB: loop body
LE: loop exit
PB: predicated region body
PF: predicated region fallthrough
CT: control target
= control target key end

     0   :  { %12 = vsyncpa [#allocation4], 0  ;;  %s697_s0 = inlined_call_operand.vmem [shape: bf16[16,256], index: 0, kind: input, shape index: {}]   ;;  %s698_s1 = inlined_call_operand.hbm [shape: bf16[256,128], index: 1, kind: input, shape index: {}]   ;;  %s699_s2 = inlined_call_operand.vmem [shape: f32[1,128], index: 2, kind: input, shape index: {}]   ;;  %s700_s3 = inlined_call_operand.hbm [shape: bf16[128,256], index: 3, kind: input, shape index: {}]   ;;  %s701_s4 = inlined_call_operand.vmem [shape: f32[1,256], index: 4, kind: input, shape index: {}]   ;;  %s702_s5 = inlined_call_operand.vmem [shape: f32[16,128], index: 5, kind: output, shape index: {0}]   ;;  %s703_s6 = inlined_call_operand.vmem [shape: f32[16,256], index: 6, kind: output, shape index: {1}]  }
   0x1   :  { %13 = vsyncpa [#allocation6], 0  ;;  %s601_s21 = smov [#allocation3]   ;;  %s553_s25 = scalar_lea.hbm %s698_s1, 2048 }
   0x2   :  { %s21_s22 = sshll.u32 %s601_s21, 4  ;;  %p554_p0 = scmp.ne.s32.totalorder %s698_s1, %s553_s25  ;;  %s22_s22 = int_to_ptr.vmem [resolvable:$true] %s21_s22 }
   0x3   :  { %p557_p1 = scmp.lt.u32.totalorder %s553_s25, %s698_s1 }
   0x5   :  { %p559_p2 = pnand %p557_p1, %p554_p0 }
   0x7   :  { %562 = shalt.err (!%p559_p2)
}
   0x8   :  { %s563_s30 = scalar_lea.vmem %s22_s22, 2048  ;;  %p568_p4 = scmp.lt.s32.totalorder %s22_s22, %s22_s22 }
   0x9   :  { %p564_p3 = scmp.ne.s32.totalorder %s22_s22, %s563_s30  ;;  %p569_p5 = scmp.lt.s32.totalorder %s563_s30, %s563_s30 }
   0xb   :  { %p570_p6 = por %p569_p5, %p568_p4 }
   0xd   :  { %p571_p7 = pnand %p570_p6, %p564_p3 }
   0xf   :  { %574 = shalt.err (!%p571_p7)
}
  0x10   :  { %s602_s7 = smov 64   ;;  %s603_s8 = smov 4  }
  0x11   :  { %27 = dma.hbm_to_vmem [thread:$0]  %s698_s1, 2048, %s22_s22, [#allocation4], %s602_s7, %s602_s7, %s603_s8  }
  0x12   :  { %s604_s11 = smov [#allocation5]   ;;  %s575_s15 = scalar_lea.hbm %s700_s3, 2048 }
  0x13   :  { %s35_s12 = sshll.u32 %s604_s11, 4  ;;  %p576_p8 = scmp.ne.s32.totalorder %s700_s3, %s575_s15  ;;  %s36_s12 = int_to_ptr.vmem [resolvable:$true] %s35_s12 }
  0x14   :  { %p579_p9 = scmp.lt.u32.totalorder %s575_s15, %s700_s3 }
  0x16   :  { %p581_p10 = pnand %p579_p9, %p576_p8 }
  0x18   :  { %584 = shalt.err (!%p581_p10)
}
  0x19   :  { %s585_s20 = scalar_lea.vmem %s36_s12, 2048  ;;  %p590_p12 = scmp.lt.s32.totalorder %s36_s12, %s36_s12 }
  0x1a   :  { %p586_p11 = scmp.ne.s32.totalorder %s36_s12, %s585_s20  ;;  %p591_p13 = scmp.lt.s32.totalorder %s585_s20, %s585_s20 }
  0x1c   :  { %p592_p0 = por %p591_p13, %p590_p12 }
  0x1e   :  { %p593_p1 = pnand %p592_p0, %p586_p11 }
  0x20   :  { %596 = shalt.err (!%p593_p1)
}
  0x21   :  { %s605_s1 = smov 128   ;;  %s606_s21 = smov 8  }
  0x22   :  { %41 = dma.hbm_to_vmem [thread:$0]  %s700_s3, 2048, %s36_s12, [#allocation6], %s605_s1, %s605_s1, %s606_s21  }
  0x23   :  { %597 = dma.done.wait [#allocation4], 2048  }
  0x24   :  { %598 = vsyncadd [#allocation4], 4294965248 }
  0x25   :  { %599 = dma.done.wait [#allocation6], 2048  }
  0x26   :  { %600 = vsyncadd [#allocation6], 4294965248  ;;  %v498_v0 = vld [vmem:[#allocation3 + $0x40] sm:$0xff]   ;;  %v500_v2 = vld [vmem:[#allocation3 + $0x48] sm:$0xff]   ;;  %v607_v34 = vmov 0   ;;  %v283_v47 = vlaneseq }
  0x27   :  { %v499_v1 = vld [vmem:[#allocation3] sm:$0xff]   ;;  %469 = vmatprep.subr.bf16.mxu0 %v498_v0  ;;  %v501_v3 = vld [vmem:[#allocation3 + $0x8] sm:$0xff]   ;;  %v502_v4 = vld [vmem:[#allocation3 + $0x50] sm:$0xff]   ;;  %405 = vmatprep.mubr.bf16.mxu1 %v607_v34 }
  0x28   :  { %470 = vmatpush3.bf16.msra.mxu0 %v499_v1  ;;  %v503_v5 = vld [vmem:[#allocation3 + $0x10] sm:$0xff]   ;;  %v504_v6 = vld [vmem:[#allocation3 + $0x58] sm:$0xff]   ;;  %v506_v8 = vld [vmem:[#allocation3 + $0x60] sm:$0xff]   ;;  %v284_v48 = vshrl.u32 %v283_v47, 7 }
  0x29   :  { %471 = vmatprep.subr.bf16.mxu0 %v500_v2  ;;  %v505_v7 = vld [vmem:[#allocation3 + $0x18] sm:$0xff]   ;;  %v507_v9 = vld [vmem:[#allocation3 + $0x20] sm:$0xff]   ;;  %v508_v10 = vld [vmem:[#allocation3 + $0x68] sm:$0xff]  }
  0x2a   :  { %v509_v11 = vld [vmem:[#allocation3 + $0x28] sm:$0xff]   ;;  %v510_v13 = vld [vmem:[#allocation3 + $0x70] sm:$0xff]   ;;  %v512_v17 = vld [vmem:[#allocation3 + $0x78] sm:$0xff]   ;;  %v285_v49 = vsub.s32 0, %v284_v48  ;;  %v289_v51 = vsub.s32 1, %v284_v48 }
  0x2b   :  { %v516_v12 = vld [vmem:[%s697_s0 + $0x4] ss:$8 sps:$4 sm:$0xff]   ;;  %v519_v15 = vld [vmem:[#allocation5] ss:$8 sps:$4 sm:$0xff]   ;;  %v511_v16 = vld [vmem:[#allocation3 + $0x30] sm:$0xff]  }
  0x2c   :  { %472 = vmatpush3.bf16.msra.mxu0 %v501_v3  ;;  %v517_v14 = vld [vmem:[#allocation5 + $0x4] ss:$8 sps:$4 sm:$0xff]   ;;  %231 = vmatprep.mubr.bf16.mxu0 %v516_v12  ;;  %v513_v18 = vld [vmem:[#allocation3 + $0x38] sm:$0xff]   ;;  %v514_v19 = vld [vmem:[%s697_s0] ss:$8 sps:$4 sm:$0xff]  }
  0x2d   :  { %473 = vmatprep.subr.bf16.mxu0 %v502_v4  ;;  %373 = vmatprep.subr.bf16.mxu1 %v517_v14  ;;  %v520_v20 = vld [vmem:[#allocation5 + $0x14] ss:$8 sps:$4 sm:$0xff]   ;;  %v522_v21 = vld [vmem:[#allocation5 + $0x10] ss:$8 sps:$4 sm:$0xff]   ;;  %v523_v22 = vld [vmem:[#allocation5 + $0x24] ss:$8 sps:$4 sm:$0xff]  }
  0x2e   :  { %374 = vmatpush1.bf16.msra.mxu1 %v519_v15  ;;  %v525_v23 = vld [vmem:[#allocation5 + $0x20] ss:$8 sps:$4 sm:$0xff]   ;;  %v526_v24 = vld [vmem:[#allocation5 + $0x34] ss:$8 sps:$4 sm:$0xff]   ;;  %v528_v25 = vld [vmem:[#allocation5 + $0x30] ss:$8 sps:$4 sm:$0xff]  }
  0x2f   :  { %375 = vmatprep.subr.bf16.mxu1 %v520_v20  ;;  %v529_v26 = vld [vmem:[#allocation5 + $0x44] ss:$8 sps:$4 sm:$0xff]   ;;  %v531_v27 = vld [vmem:[#allocation5 + $0x40] ss:$8 sps:$4 sm:$0xff]   ;;  %v532_v28 = vld [vmem:[#allocation5 + $0x54] ss:$8 sps:$4 sm:$0xff]  }
  0x30   :  { %474 = vmatpush3.bf16.msra.mxu0 %v503_v5  ;;  %v534_v29 = vld [vmem:[#allocation5 + $0x50] ss:$8 sps:$4 sm:$0xff]   ;;  %v535_v30 = vld [vmem:[#allocation5 + $0x64] ss:$8 sps:$4 sm:$0xff]   ;;  %v537_v31 = vld [vmem:[#allocation5 + $0x60] ss:$8 sps:$4 sm:$0xff]  }
  0x31   :  { %475 = vmatprep.subr.bf16.mxu0 %v504_v6  ;;  %v538_v32 = vld [vmem:[#allocation5 + $0x74] ss:$8 sps:$4 sm:$0xff]   ;;  %v540_v33 = vld [vmem:[#allocation5 + $0x70] ss:$8 sps:$4 sm:$0xff]   ;;  %v452_v37 = vld [vmem:[%s699_s2] ss:$0 sm:$0xff] }
  0x32   :  { %376 = vmatpush1.bf16.msra.mxu1 %v522_v21  ;;  %v281_v50 = vld [vmem:[%s701_s4] sm:$0x3] }
  0x33   :  { %377 = vmatprep.subr.bf16.mxu1 %v523_v22  ;;  %v286_v52 = vrot.slane %v281_v50, %v285_v49  ;;  %v290_v53 = vrot.slane %v281_v50, %v289_v51 }
  0x34   :  { %476 = vmatpush3.bf16.msra.mxu0 %v505_v7 }
  0x35   :  { %477 = vmatprep.subr.bf16.mxu0 %v506_v8 }
  0x36   :  { %378 = vmatpush1.bf16.msra.mxu1 %v525_v23 }
  0x37   :  { %379 = vmatprep.subr.bf16.mxu1 %v526_v24 }
  0x38   :  { %478 = vmatpush3.bf16.msra.mxu0 %v507_v9 }
  0x39   :  { %479 = vmatprep.subr.bf16.mxu0 %v508_v10 }
  0x3a   :  { %380 = vmatpush1.bf16.msra.mxu1 %v528_v25 }
  0x3b   :  { %381 = vmatprep.subr.bf16.mxu1 %v529_v26 }
  0x3c   :  { %480 = vmatpush3.bf16.msra.mxu0 %v509_v11 }
  0x3d   :  { %481 = vmatprep.subr.bf16.mxu0 %v510_v13 }
  0x3e   :  { %382 = vmatpush1.bf16.msra.mxu1 %v531_v27 }
  0x3f   :  { %383 = vmatprep.subr.bf16.mxu1 %v532_v28 }
  0x40   :  { %482 = vmatpush3.bf16.msra.mxu0 %v511_v16 }
  0x41   :  { %483 = vmatprep.subr.bf16.mxu0 %v512_v17 }
  0x42   :  { %384 = vmatpush1.bf16.msra.mxu1 %v534_v29 }
  0x43   :  { %385 = vmatprep.subr.bf16.mxu1 %v535_v30 }
  0x44   :  { %484 = vmatpush3.bf16.msra.mxu0 %v513_v18 }
  0x46   :  { %386 = vmatpush1.bf16.msra.mxu1 %v537_v31 }
  0x47   :  { %232 = vmatmul.mubr.bf16.vlgmr.msra.gmra.mrb[0].mxu0 %v514_v19  ;;  %387 = vmatprep.subr.bf16.mxu1 %v538_v32 }
  0x4a   :  { %388 = vmatpush1.bf16.msra.mxu1 %v540_v33 }
 0x11a   :  { %v485_v35 = vpop.f32.mrb[0].mxu0 }
 0x11b   :  { %v486_v36 = vpop.f32.mrb[1].mxu0 }
 0x11c   :  { %v487_v38 = vadd.f32 %v486_v36, %v485_v35  ;;  %v488_v39 = vpop.f32.mrb[2].mxu0 }
 0x11d   :  { %v489_v40 = vpop.f32.mrb[3].mxu0 }
 0x11e   :  { %v256_v41 = vadd.f32 %v487_v38, %v452_v37  ;;  %v490_v42 = vadd.f32 %v489_v40, %v488_v39 }
 0x120   :  { %541 = vtanh.f32 %v256_v41  ;;  %v257_v43 = vadd.f32 %v490_v42, %v452_v37 }
 0x122   :  { %543 = vtanh.f32 %v257_v43 }
 0x12a   :  { %v542_v44 = vpop.eup %541 }
 0x12b   :  { %260 = vst [vmem:[%s702_s5] sm:$0xff] %v542_v44 }
 0x12c   :  { %v544_v45 = vpop.eup %543 }
 0x12d   :  { %261 = vst [vmem:[%s702_s5 + $0x8] sm:$0xff] %v544_v45  ;;  %v264_v46 = vpack.c.bf16 %v544_v45, %v542_v44 }
 0x12f   :  { %406 = vmatmul.mubr.bf16.vlgmr.msra.gmra.mrb[0].mxu1 %v264_v46 }
 0x202   :  { %v407_v54 = vpop.f32.mrb[0].mxu1 }
 0x203   :  { %v408_v55 = vadd.f32 %v407_v54, %v286_v52  ;;  %v409_v56 = vpop.f32.mrb[1].mxu1 }
 0x204   :  { %v410_v57 = vadd.f32 %v409_v56, %v290_v53  ;;  %v411_v58 = vpop.f32.mrb[2].mxu1 }
 0x205   :  { %545 = vtanh.f32 %v408_v55  ;;  %v412_v59 = vadd.f32 %v411_v58, %v286_v52  ;;  %v413_v60 = vpop.f32.mrb[3].mxu1 }
 0x206   :  { %547 = vtanh.f32 %v410_v57  ;;  %v414_v61 = vadd.f32 %v413_v60, %v290_v53 }
 0x207   :  { %549 = vtanh.f32 %v412_v59 }
 0x208   :  { %551 = vtanh.f32 %v414_v61 }
 0x20f   :  { %v546_v62 = vpop.eup %545 }
 0x210   :  { %v548_v63 = vpop.eup %547  ;;  %420 = vst [vmem:[%s703_s6] sm:$0xff] %v546_v62 }
 0x211   :  { %v550_v0 = vpop.eup %549  ;;  %421 = vst [vmem:[%s703_s6 + $0x8] sm:$0xff] %v548_v63 }
 0x212   :  { %v552_v1 = vpop.eup %551  ;;  %422 = vst [vmem:[%s703_s6 + $0x10] sm:$0xff] %v550_v0 }
 0x213   :  { %423 = vst [vmem:[%s703_s6 + $0x18] sm:$0xff] %v552_v1 }
 0x214   :  { %432 = vsyncpa [#allocation4], 1 }
 0x215   :  { %433 = vsyncpa [#allocation6], 1 }

</bundles_post_ra>
